<compile_context>
chip_gen: v7x
topology: tpu7x:2x2x1
jax: 0.10.0
libtpu: 0.0.40
codegen_flags: <defaults>
</compile_context>

<pallas_src>
import functools
import math

import numpy as np
import jax
import jax.numpy as jnp
from jax.experimental import pallas as pl
from jax.experimental.pallas import tpu as pltpu


# ----------------------------------------------------------------------------
# Tiling helpers
# ----------------------------------------------------------------------------
_ROW_TARGET = 512    # sublane tile target (multiple of 8)
_COL_TARGET = 1024   # lane tile target (multiple of 128)


def _block_dim(dim, target):
    """Full extent if small, otherwise an aligned target tile (edge blocks are
    masked by Pallas)."""
    if dim <= target:
        return dim
    return target


def _compiler_params():
    return pltpu.CompilerParams(
        dimension_semantics=("parallel", "parallel"),
        vmem_limit_bytes=64 * 1024 * 1024,
    )


# ----------------------------------------------------------------------------
# Pallas kernels
# ----------------------------------------------------------------------------
def _bernoulli_kernel(x_ref, bits_ref, o_ref, *, threshold, scale):
    """out = x * scale where bits < threshold else 0 (element-wise)."""
    xv = x_ref[...]
    keep = bits_ref[...] < threshold              # uint32 compare, no float RNG
    o_ref[...] = jnp.where(keep, xv * scale, jnp.zeros_like(xv)).astype(o_ref.dtype)


def _mul_kernel(x_ref, n_ref, o_ref):
    """out = x * noise (element-wise; used for gaussian element-wise path)."""
    o_ref[...] = (x_ref[...] * n_ref[...]).astype(o_ref.dtype)


def _row_scale_kernel(x_ref, noise_ref, o_ref):
    """out = x * noise_row; noise block is (br, 1) and broadcasts over lanes."""
    o_ref[...] = (x_ref[...] * noise_ref[...]).astype(o_ref.dtype)


# ----------------------------------------------------------------------------
# pallas_call wrappers
# ----------------------------------------------------------------------------
def _elementwise_pallas(x2d, aux2d, kernel):
    """Tiled element-wise kernel: x2d and aux2d share the same (R, C) shape."""
    R, C = x2d.shape
    br = _block_dim(R, _ROW_TARGET)
    bc = _block_dim(C, _COL_TARGET)
    grid = (pl.cdiv(R, br), pl.cdiv(C, bc))
    return pl.pallas_call(
        kernel,
        out_shape=jax.ShapeDtypeStruct(x2d.shape, x2d.dtype),
        grid=grid,
        in_specs=[
            pl.BlockSpec((br, bc), lambda i, j: (i, j)),
            pl.BlockSpec((br, bc), lambda i, j: (i, j)),
        ],
        out_specs=pl.BlockSpec((br, bc), lambda i, j: (i, j)),
        compiler_params=_compiler_params(),
    )(x2d, aux2d)


def _row_scale_pallas(x2d, noise_col):
    """Tiled per-row scaling: x2d is (R, C), noise_col is (R, 1)."""
    R, C = x2d.shape
    br = _block_dim(R, _ROW_TARGET)
    bc = _block_dim(C, _COL_TARGET)
    grid = (pl.cdiv(R, br), pl.cdiv(C, bc))
    return pl.pallas_call(
        _row_scale_kernel,
        out_shape=jax.ShapeDtypeStruct(x2d.shape, x2d.dtype),
        grid=grid,
        in_specs=[
            pl.BlockSpec((br, bc), lambda i, j: (i, j)),
            pl.BlockSpec((br, 1), lambda i, j: (i, 0)),
        ],
        out_specs=pl.BlockSpec((br, bc), lambda i, j: (i, j)),
        compiler_params=_compiler_params(),
    )(x2d, noise_col)


# ----------------------------------------------------------------------------
# Forward-path helpers
# ----------------------------------------------------------------------------
_LANES = 1024  # lane-dense layout for channel_wise=False


def _elementwise_dropout(x, key, keep_p, noise_type, scaling_type):
    orig_shape = x.shape
    total = int(np.prod(orig_shape))
    rows = pl.cdiv(total, _LANES)
    pad = rows * _LANES - total

    xf = x.reshape(-1)
    if pad:
        xf = jnp.pad(xf, (0, pad))
    x2d = xf.reshape(rows, _LANES)

    if noise_type == "bernoulli":
        bits = jax.random.bits(key, (rows, _LANES), dtype=jnp.uint32)
        threshold = np.uint32(min(int(round(keep_p * 2.0 ** 32)), 2 ** 32 - 1))
        scale = (1.0 / keep_p) if scaling_type == "mean" else 1.0
        kernel = functools.partial(_bernoulli_kernel,
                                   threshold=threshold, scale=scale)
        y2d = _elementwise_pallas(x2d, bits, kernel)
    else:  # gaussian: noise ~ N(1, (1-p)/p); 'mean' scaling is a no-op
        std = (1.0 - keep_p) / keep_p
        noise = (1.0 + std * jax.random.normal(key, (rows, _LANES),
                                               dtype=jnp.float32)).astype(x.dtype)
        y2d = _elementwise_pallas(x2d, noise, _mul_kernel)

    y = y2d.reshape(-1)
    if pad:
        y = y[:total]
    return y.reshape(orig_shape)


def _channel_wise_dropout(x, key, keep_p, noise_type, scaling_type):
    n, c = x.shape[0], x.shape[1]
    spatial = int(np.prod(x.shape[2:])) if x.ndim > 2 else 1
    rows = n * c

    # Per-(batch, channel) multiplicative noise only -- (rows, 1) column.
    if noise_type == "bernoulli":
        keep = jax.random.bernoulli(key, keep_p, (rows, 1))
        scale = (1.0 / keep_p) if scaling_type == "mean" else 1.0
        noise = keep.astype(x.dtype) * jnp.asarray(scale, dtype=x.dtype)
    else:  # gaussian
        std = (1.0 - keep_p) / keep_p
        noise = (1.0 + std * jax.random.normal(key, (rows, 1),
                                               dtype=jnp.float32)).astype(x.dtype)

    x2d = x.reshape(rows, spatial)
    y2d = _row_scale_pallas(x2d, noise)
    return y2d.reshape(x.shape)


# ----------------------------------------------------------------------------
# Module-equivalent wrapper (state / bookkeeping stays in Python).
# ----------------------------------------------------------------------------
class FlexibleDropout:
    def __init__(self, drop_probability, noise_type="bernoulli",
                 channel_wise=False, scaling_type="mean",
                 max_steps=float("inf")):
        self.p = 1.0 - drop_probability
        self.noise_type = noise_type.lower()
        assert self.noise_type in ("bernoulli", "gaussian")
        self.channel_wise = channel_wise
        self.scaling_type = scaling_type.lower()
        assert self.scaling_type in ("mean", "none")
        self.max_steps = max_steps
        self.current_iteration = 0
        self.training = True

    def train(self):
        self.training = True
        return self

    def eval(self):
        self.training = False
        return self

    def __call__(self, x, key=None):
        if (self.training and self.current_iteration < self.max_steps
                and self.p < 1.0):
            self.current_iteration += 1
            if key is None:
                key = jax.random.PRNGKey(0)
            if self.channel_wise:
                return _channel_wise_dropout(x, key, self.p, self.noise_type,
                                             self.scaling_type)
            return _elementwise_dropout(x, key, self.p, self.noise_type,
                                        self.scaling_type)
        return x


# ----------------------------------------------------------------------------
# Demo / self-check
# ----------------------------------------------------------------------------
if __name__ == "__main__":
    root = jax.random.PRNGKey(0)
    xkey, k1, k2 = jax.random.split(root, 3)
    x = jax.random.normal(xkey, (2, 4, 16, 16), dtype=jnp.float32)  # NCHW

    # bernoulli, element-wise, mean-scaled
    drop = FlexibleDropout(drop_probability=0.3, noise_type="bernoulli",
                           channel_wise=False, scaling_type="mean")
    y = jax.block_until_ready(drop(x, key=k1))
    keep_p = drop.p
    ratio = jnp.where(jnp.abs(x) > 1e-6, y / x, 0.0)
    ok_b = bool(jnp.all(
        (jnp.abs(ratio) < 1e-5) | (jnp.abs(ratio - 1.0 / keep_p) < 1e-4)))

    # gaussian, channel-wise (noise constant across spatial dims per (n, c))
    drop_g = FlexibleDropout(drop_probability=0.3, noise_type="gaussian",
                             channel_wise=True, scaling_type="mean")
    yg = jax.block_until_ready(drop_g(x, key=k2))
    ratio_g = (yg / x).reshape(2 * 4, -1)
    ok_g = bool(jnp.all(jnp.abs(ratio_g - ratio_g[:, :1]) < 1e-3))

    # eval mode / p >= 1.0 -> identity
    drop_id = FlexibleDropout(drop_probability=0.0)
    ok_id = bool(jnp.all(drop_id(x) == x))

    if ok_b and ok_g and ok_id:
        print("KERNEL_OK")
    else:
        print("KERNEL_MISMATCH", ok_b, ok_g, ok_id)
</pallas_src>

<mosaic_0001>
module attributes {stable_mosaic.version = 11 : i64} {
  func.func @_bernoulli_kernel(%arg0: i32, %arg1: i32, %arg2: memref<2x1024xf32, #tpu.memory_space<vmem>>, %arg3: memref<2x1024xi32, #tpu.memory_space<vmem>>, %arg4: memref<2x1024xf32, #tpu.memory_space<vmem>>) attributes {dimension_semantics = [#tpu.dimension_semantics<parallel>, #tpu.dimension_semantics<parallel>], iteration_bounds = array<i64: 1, 1>, scalar_prefetch = 0 : i64, scratch_operands = 0 : i64, tpu.core_type = #tpu.core_type<tc>, window_params = [{transform_indices = @transform_0, window_bounds = array<i64: 2, 1024>}, {transform_indices = @transform_1, window_bounds = array<i64: 2, 1024>}, {transform_indices = @transform_2, window_bounds = array<i64: 2, 1024>}]} {
    %c0 = arith.constant 0 : index
    %c0_0 = arith.constant 0 : index
    %0 = vector.load %arg2[%c0, %c0_0] : memref<2x1024xf32, #tpu.memory_space<vmem>>, vector<2x1024xf32>
    %c0_1 = arith.constant 0 : index
    %c0_2 = arith.constant 0 : index
    %1 = vector.load %arg3[%c0_1, %c0_2] : memref<2x1024xi32, #tpu.memory_space<vmem>>, vector<2x1024xi32>
    %c-1288490189_i32 = arith.constant -1288490189 : i32
    %2 = vector.broadcast %c-1288490189_i32 : i32 to vector<2x1024xi32>
    %3 = arith.cmpi ult, %1, %2 : vector<2x1024xi32>
    %cst = arith.constant 1.42857146 : f32
    %4 = vector.broadcast %cst : f32 to vector<2x1024xf32>
    %5 = arith.mulf %0, %4 : vector<2x1024xf32>
    %cst_3 = arith.constant 0.000000e+00 : f32
    %6 = vector.broadcast %cst_3 : f32 to vector<2x1024xf32>
    %7 = arith.select %3, %5, %6 : vector<2x1024xi1>, vector<2x1024xf32>
    %c0_4 = arith.constant 0 : index
    %c0_5 = arith.constant 0 : index
    %8 = vector.load %arg4[%c0_4, %c0_5] : memref<2x1024xf32, #tpu.memory_space<vmem>>, vector<2x1024xf32>
    tpu.vector_store %arg4[%c0_4, %c0_5], %7 {strides = array<i32>} : memref<2x1024xf32, #tpu.memory_space<vmem>>, vector<2x1024xf32>,
    return
  }
  func.func @transform_0(%arg0: i32, %arg1: i32) -> (i32, i32) {
    %c0_i32 = arith.constant 0 : i32
    return %arg0, %arg1 : i32, i32
  }
  func.func @transform_1(%arg0: i32, %arg1: i32) -> (i32, i32) {
    %c0_i32 = arith.constant 0 : i32
    return %arg0, %arg1 : i32, i32
  }
  func.func @transform_2(%arg0: i32, %arg1: i32) -> (i32, i32) {
    %c0_i32 = arith.constant 0 : i32
    return %arg0, %arg1 : i32, i32
  }
}

</mosaic_0001>

<bundles_post_ra>
// kernel: tpu_custom_call.1
= control target key start
LH: loop header
LB: loop body
LE: loop exit
PB: predicated region body
PF: predicated region fallthrough
CT: control target
= control target key end

     0   :  { %7 = vsyncpa [#allocation3], 0  ;;  %s193_s0 = inlined_call_operand.hbm [shape: f32[2,1024], index: 0, kind: input, shape index: {}]   ;;  %s194_s1 = inlined_call_operand.hbm [shape: u32[2,1024], index: 1, kind: input, shape index: {}]   ;;  %s195_s2 = inlined_call_operand.hbm [shape: f32[2,1024], index: 2, kind: output, shape index: {}]  }
   0x1   :  { %8 = vsyncpa [#allocation6], 0 }
   0x2   :  { %9 = vsyncpa [#allocation4], 0  ;;  %s139_s9 = smov [#allocation2]   ;;  %s140_s11 = smov [#allocation5]  }
   0x3   :  { %s16_s10 = sshll.u32 %s139_s9, 4  ;;  %s26_s12 = sshll.u32 %s140_s11, 4  ;;  %s17_s10 = int_to_ptr.vmem [resolvable:$true] %s16_s10  ;;  %s27_s12 = int_to_ptr.vmem [resolvable:$true] %s26_s12 }
   0x4   :  { %s67_s15 = scalar_lea.hbm %s193_s0, 256 }
   0x5   :  { %p68_p0 = scmp.ne.s32.totalorder %s193_s0, %s67_s15  ;;  %p71_p1 = scmp.lt.u32.totalorder %s67_s15, %s193_s0 }
   0x7   :  { %p73_p2 = pnand %p71_p1, %p68_p0 }
   0x9   :  { %76 = shalt.err (!%p73_p2)
}
   0xa   :  { %s77_s20 = scalar_lea.vmem %s17_s10, 256  ;;  %p82_p4 = scmp.lt.s32.totalorder %s17_s10, %s17_s10 }
   0xb   :  { %p78_p3 = scmp.ne.s32.totalorder %s17_s10, %s77_s20  ;;  %p83_p5 = scmp.lt.s32.totalorder %s77_s20, %s77_s20 }
   0xd   :  { %p84_p6 = por %p83_p5, %p82_p4 }
   0xf   :  { %p85_p7 = pnand %p84_p6, %p78_p3 }
  0x11   :  { %88 = shalt.err (!%p85_p7)
}
  0x12   :  { %19 = dma.hbm_to_vmem [thread:$0]  %s193_s0, 256, %s17_s10, [#allocation3]  }
  0x13   :  { %s89_s25 = scalar_lea.hbm %s194_s1, 256 }
  0x14   :  { %p90_p8 = scmp.ne.s32.totalorder %s194_s1, %s89_s25  ;;  %p93_p9 = scmp.lt.u32.totalorder %s89_s25, %s194_s1 }
  0x16   :  { %p95_p10 = pnand %p93_p9, %p90_p8 }
  0x18   :  { %98 = shalt.err (!%p95_p10)
}
  0x19   :  { %s99_s30 = scalar_lea.vmem %s27_s12, 256  ;;  %p104_p12 = scmp.lt.s32.totalorder %s27_s12, %s27_s12 }
  0x1a   :  { %p100_p11 = scmp.ne.s32.totalorder %s27_s12, %s99_s30  ;;  %p105_p13 = scmp.lt.s32.totalorder %s99_s30, %s99_s30 }
  0x1c   :  { %p106_p0 = por %p105_p13, %p104_p12 }
  0x1e   :  { %p107_p1 = pnand %p106_p0, %p100_p11 }
  0x20   :  { %110 = shalt.err (!%p107_p1)
}
  0x21   :  { %29 = dma.hbm_to_vmem [thread:$0]  %s194_s1, 256, %s27_s12, [#allocation6]  }
  0x22   :  { %133 = dma.done.wait [#allocation3], 256  }
  0x23   :  { %134 = vsyncadd [#allocation3], 4294967040 }
  0x24   :  { %135 = dma.done.wait [#allocation6], 256  }
  0x25   :  { %136 = vsyncadd [#allocation6], 4294967040  ;;  %v36_v0 = vld [vmem:[#allocation2] sm:$0xff]  ;;  %v38_v1 = vld [vmem:[#allocation5] sm:$0xff]  ;;  %s141_s4 = smov [#allocation7]  }
  0x26   :  { %v37_v2 = vld [vmem:[#allocation2 + $0x8] sm:$0xff]  ;;  %s54_s5 = sshll.u32 %s141_s4, 4  ;;  %vm40_vm0 = vcmp.lt.u32.totalorder %v38_v1, 3006477107  ;;  %v42_v3 = vmul.f32 1.4285715, %v36_v0  ;;  %s55_s5 = int_to_ptr.vmem [resolvable:$true] %s54_s5 }
  0x27   :  { %v39_v4 = vld [vmem:[#allocation5 + $0x8] sm:$0xff]  ;;  %v43_v5 = vmul.f32 1.4285715, %v37_v2  ;;  %s111_s1 = scalar_lea.vmem %s55_s5, 256  ;;  %p116_p3 = scmp.lt.s32.totalorder %s55_s5, %s55_s5 }
  0x28   :  { %vm41_vm1 = vcmp.lt.u32.totalorder %v39_v4, 3006477107  ;;  %v44_v6 = vsel %vm40_vm0, %v42_v3, 0.0  ;;  %p112_p2 = scmp.ne.s32.totalorder %s55_s5, %s111_s1  ;;  %p117_p4 = scmp.lt.s32.totalorder %s111_s1, %s111_s1 }
  0x29   :  { %46 = vst [vmem:[#allocation7] sm:$0xff] %v44_v6  ;;  %v45_v7 = vsel %vm41_vm1, %v43_v5, 0.0 }
  0x2a   :  { %47 = vst [vmem:[#allocation7 + $0x8] sm:$0xff] %v45_v7  ;;  %p118_p5 = por %p117_p4, %p116_p3 }
  0x2c   :  { %p119_p6 = pnand %p118_p5, %p112_p2 }
  0x2e   :  { %122 = shalt.err (!%p119_p6)
}
  0x2f   :  { %s123_s8 = scalar_lea.hbm %s195_s2, 256 }
  0x30   :  { %p124_p7 = scmp.ne.s32.totalorder %s195_s2, %s123_s8  ;;  %p127_p8 = scmp.lt.u32.totalorder %s123_s8, %s195_s2 }
  0x32   :  { %p129_p9 = pnand %p127_p8, %p124_p7 }
  0x34   :  { %132 = shalt.err (!%p129_p9)
}
  0x35   :  { %57 = dma.vmem_to_hbm [thread:$0]  %s55_s5, 256, %s195_s2, [#allocation4]  }
  0x36   :  { %137 = dma.done.wait [#allocation4], 256  }
  0x37   :  { %138 = vsyncadd [#allocation4], 4294967040 }
  0x38   :  { %61 = vsyncpa [#allocation3], 1 }
  0x39   :  { %62 = vsyncpa [#allocation6], 1 }
  0x3a   :  { %63 = vsyncpa [#allocation4], 1 }

</bundles_post_ra>
